<compile_context>
chip_gen: v7x
topology: tpu7x:2x2x1
jax: 0.10.0
libtpu: 0.0.40
codegen_flags: <defaults>
</compile_context>

<pallas_src>
import functools

import jax
import jax.numpy as jnp
import numpy as np
from jax.experimental import pallas as pl
from jax.experimental.pallas import tpu as pltpu


# ---------------------------------------------------------------------------
# Generation-aware budgets & tiling helpers
# ---------------------------------------------------------------------------
def _round_up(n, m):
    return -(-n // m) * m


def _vmem_budgets():
    """(vmem_limit_bytes, x_double_buffer_budget_bytes), per TPU generation."""
    mib = 1024 * 1024
    try:
        kind = jax.devices()[0].device_kind.lower()
    except Exception:  # pragma: no cover - e.g. interpret mode
        kind = ""
    if "v7" in kind:                       # v7x: 64 MiB VMEM per TensorCore
        return 46 * mib, 12 * mib
    if "v5 lite" in kind or "v5e" in kind or "v6" in kind:   # 128 MiB VMEM
        return 64 * mib, 24 * mib
    return 32 * mib, 8 * mib               # unknown / older: conservative


def _choose_tiles(B, C, HW, bytes_per_elem, x_budget_bytes):
    """Pick (batch_tile, hw_tile) for the [B*C, HW] x layout.

    bt divides B and is either B itself or a multiple of 8 (so the x block's
    sublane extent bt*C is a multiple of 8 or the full extent).  hw_t is the
    full HW extent when the double-buffered x tile fits the budget, otherwise
    the largest multiple-of-128 divisor of HW that does.
    """
    if B <= 256:
        bt = B
    else:
        bt = next((t for t in (256, 128, 64, 32, 16, 8) if B % t == 0), B)

    def x_bytes(bt_, hw_):
        return 2 * bt_ * C * hw_ * bytes_per_elem          # double-buffered

    hw_cands = [HW] + [t for t in (4096, 2048, 1024, 512, 256, 128)
                       if t < HW and HW % t == 0]
    hw_t = next((t for t in hw_cands if x_bytes(bt, t) <= x_budget_bytes),
                hw_cands[-1])
    # Oddly-sized / huge batches: shrink bt too (keeping divisibility) if even
    # the smallest hw tile busts the budget.
    while (x_bytes(bt, hw_t) > x_budget_bytes and bt >= 16
           and bt % 2 == 0 and B % (bt // 2) == 0):
        bt //= 2
    return bt, hw_t


def _fold_linear_head(w1, b1, w2, b2):
    """Fold (avg-pool -> Linear(C,1000)) o Linear(1000,D) into one C x D linear."""
    w1f = w1.astype(jnp.float32)
    w2f = w2.astype(jnp.float32)
    W = jnp.dot(w1f, w2f)                                   # (C, D)
    bias = jnp.dot(b1.astype(jnp.float32), w2f) + b2.astype(jnp.float32)  # (1, D)
    return W, bias


def _embed_from_pool(pool_acc, w_ref, b_ref, inv_hw):
    """e = pooled @ W + bias, from the (bt*C, 1) pooled-sum scratch."""
    C = w_ref.shape[0]
    bt = pool_acc.shape[0] // C
    e = b_ref[...].astype(jnp.float32)                      # (1, D), broadcasts
    for ci in range(C):                                     # static unroll, C small
        ch = pool_acc[pl.ds(ci, bt, stride=C), :]           # (bt, 1) channel ci sums
        e = e + (ch * inv_hw) * w_ref[ci:ci + 1, :]
    return e                                                # (bt, D)


# ---------------------------------------------------------------------------
# Kernel 1: forward(x, c=None)  ->  cat([masked_embedding, embedded_x], dim=1)
# ---------------------------------------------------------------------------
def _general_kernel(x_ref, w_ref, b_ref, m_ref, out_ref, pool_acc, *, inv_hw):
    # x_ref: [bt*C, hw_t]  w: [C, D]  b: [1, D]  m: [n_cond, D]
    # out_ref: [bt, slab_w] with slab_w = round_up((n_cond+1)*D, 128)
    hw_i = pl.program_id(1)
    n_hw = pl.num_programs(1)

    @pl.when(hw_i == 0)
    def _():
        pool_acc[...] = jnp.zeros_like(pool_acc)

    # Partial spatial sum for this HW tile (lane reduce -> XLU, HBM-bound loop).
    pool_acc[...] += jnp.sum(x_ref[...].astype(jnp.float32), axis=-1,
                             keepdims=True)

    @pl.when(hw_i == n_hw - 1)
    def _():
        e = _embed_from_pool(pool_acc, w_ref, b_ref, inv_hw)    # [bt, D]

        # NOTE: the c=None path uses the *raw* mask weights (no ReLU); only the
        # conditional path applies ReLU. This mirrors the PyTorch reference.
        n_cond = m_ref.shape[0]
        parts = []
        for k in range(n_cond):                                 # static unroll
            mk = e * m_ref[k:k + 1, :]                          # [bt, D]
            inv = jax.lax.rsqrt(jnp.sum(mk * mk, axis=1, keepdims=True) + 1e-20)
            parts.append(mk * inv)
        parts.append(e)                                         # un-normalized embedded_x
        slab = jnp.concatenate(parts, axis=1)                   # [bt, (n_cond+1)*D]
        pad = out_ref.shape[1] - slab.shape[1]
        if pad:                                                 # lane-dense store
            slab = jnp.concatenate(
                [slab, jnp.zeros((slab.shape[0], pad), slab.dtype)], axis=1)
        out_ref[...] = slab


# ---------------------------------------------------------------------------
# Kernel 2: forward(x, c) -> (masked_embedding, mask_norm, embed_norm, embedded_x)
# ---------------------------------------------------------------------------
def _conditional_kernel(x_ref, c_ref, w_ref, b_ref, m_ref,
                        out_ref, norms_ref, pool_acc, *, inv_hw):
    # out_ref: [bt, slab_w] = [normalized masked embedding | embedded_x | pad]
    # norms_ref: [bt, 2] per-sample partials: (L1 of selected mask, sum-sq of e)
    hw_i = pl.program_id(1)
    n_hw = pl.num_programs(1)

    @pl.when(hw_i == 0)
    def _():
        pool_acc[...] = jnp.zeros_like(pool_acc)

    pool_acc[...] += jnp.sum(x_ref[...].astype(jnp.float32), axis=-1,
                             keepdims=True)

    @pl.when(hw_i == n_hw - 1)
    def _():
        D = m_ref.shape[1]
        e = _embed_from_pool(pool_acc, w_ref, b_ref, inv_hw)    # [bt, D]

        # Mask lookup as a VPU broadcast-select over the small condition set.
        c_col = c_ref[...]                                      # [bt, 1] int32
        sel = jnp.zeros_like(e)
        for k in range(m_ref.shape[0]):                         # static unroll
            mk = jnp.maximum(m_ref[k:k + 1, :], 0.0)            # learnedmask -> ReLU
            sel = sel + jnp.where(c_col == k, mk, 0.0)
        masked = e * sel

        inv = jax.lax.rsqrt(jnp.sum(masked * masked, axis=1, keepdims=True) + 1e-20)
        slab = jnp.concatenate([masked * inv, e], axis=1)       # [bt, 2*D]
        pad = out_ref.shape[1] - slab.shape[1]
        if pad:
            slab = jnp.concatenate(
                [slab, jnp.zeros((slab.shape[0], pad), slab.dtype)], axis=1)
        out_ref[...] = slab

        # Per-sample partial norms (reduced in the wrapper) so the batch grid
        # axis can be "parallel" (v7x megacore) with no shared-scratch races.
        norms_ref[...] = jnp.concatenate(
            [jnp.sum(jnp.abs(sel), axis=1, keepdims=True),      # L1 of selected mask
             jnp.sum(e * e, axis=1, keepdims=True)], axis=1)    # sum-sq of embedded_x


# ---------------------------------------------------------------------------
# Wrappers
# ---------------------------------------------------------------------------
def type_specific_general(x, w1, b1, w2, b2, masks):
    """forward(x, c=None): returns [B, n_conditions + 1, dim_embed]."""
    B, C, H, W = x.shape
    n_cond, D = masks.shape
    HW = H * W
    x2 = x.reshape(B * C, HW)                               # sublane-dense layout
    Wf, bf = _fold_linear_head(w1, b1, w2, b2)              # (C, D), (1, D)
    vmem_limit, x_budget = _vmem_budgets()
    bt, hw_t = _choose_tiles(B, C, HW, x2.dtype.itemsize, x_budget)
    grid = (B // bt, HW // hw_t)
    slab_w = _round_up((n_cond + 1) * D, 128)               # lane-dense output slab

    kernel = functools.partial(_general_kernel, inv_hw=1.0 / HW)
    slab = pl.pallas_call(
        kernel,
        out_shape=jax.ShapeDtypeStruct((B, slab_w), jnp.float32),
        grid_spec=pltpu.PrefetchScalarGridSpec(
            num_scalar_prefetch=0,
            grid=grid,
            in_specs=[
                pl.BlockSpec((bt * C, hw_t), lambda i, j: (i, j)),
                pl.BlockSpec((C, D), lambda i, j: (0, 0)),
                pl.BlockSpec((1, D), lambda i, j: (0, 0)),
                pl.BlockSpec((n_cond, D), lambda i, j: (0, 0)),
            ],
            out_specs=pl.BlockSpec((bt, slab_w), lambda i, j: (i, 0)),
            scratch_shapes=[pltpu.VMEM((bt * C, 1), jnp.float32)],
        ),
        compiler_params=pltpu.CompilerParams(
            dimension_semantics=("parallel", "arbitrary"),
            vmem_limit_bytes=vmem_limit),
    )(x2, Wf, bf, masks)
    return slab[:, :(n_cond + 1) * D].reshape(B, n_cond + 1, D)


def type_specific_conditional(x, c, w1, b1, w2, b2, masks):
    """forward(x, c): returns (masked_embedding, mask_norm, embed_norm, embedded_x)."""
    B, C, H, W = x.shape
    n_cond, D = masks.shape
    HW = H * W
    x2 = x.reshape(B * C, HW)
    c2 = c.astype(jnp.int32).reshape(B, 1)
    Wf, bf = _fold_linear_head(w1, b1, w2, b2)
    vmem_limit, x_budget = _vmem_budgets()
    bt, hw_t = _choose_tiles(B, C, HW, x2.dtype.itemsize, x_budget)
    grid = (B // bt, HW // hw_t)
    slab_w = _round_up(2 * D, 128)

    kernel = functools.partial(_conditional_kernel, inv_hw=1.0 / HW)
    slab, norms = pl.pallas_call(
        kernel,
        out_shape=(
            jax.ShapeDtypeStruct((B, slab_w), jnp.float32),
            jax.ShapeDtypeStruct((B, 2), jnp.float32),
        ),
        grid_spec=pltpu.PrefetchScalarGridSpec(
            num_scalar_prefetch=0,
            grid=grid,
            in_specs=[
                pl.BlockSpec((bt * C, hw_t), lambda i, j: (i, j)),
                pl.BlockSpec((bt, 1), lambda i, j: (i, 0)),
                pl.BlockSpec((C, D), lambda i, j: (0, 0)),
                pl.BlockSpec((1, D), lambda i, j: (0, 0)),
                pl.BlockSpec((n_cond, D), lambda i, j: (0, 0)),
            ],
            out_specs=(
                pl.BlockSpec((bt, slab_w), lambda i, j: (i, 0)),
                pl.BlockSpec((bt, 2), lambda i, j: (i, 0)),
            ),
            scratch_shapes=[pltpu.VMEM((bt * C, 1), jnp.float32)],
        ),
        compiler_params=pltpu.CompilerParams(
            dimension_semantics=("parallel", "arbitrary"),
            vmem_limit_bytes=vmem_limit),
    )(x2, c2, Wf, bf, masks)

    # Tiny whole-batch scalar reductions over the per-sample partials (XLA).
    mask_norm = jnp.sum(norms[:, 0])
    embed_norm = jnp.sqrt(jnp.sum(norms[:, 1]))
    return slab[:, :D], mask_norm, embed_norm, slab[:, D:2 * D]


# ---------------------------------------------------------------------------
# Pure-JAX references (f32, mirroring the PyTorch module) for correctness
# ---------------------------------------------------------------------------
def _reference_general(x, w1, b1, w2, b2, masks):
    B, C, H, W = x.shape
    pooled = jnp.mean(x.reshape(B, C, H * W), axis=-1)
    e = pooled @ w1 + b1
    e = e @ w2 + b2
    masked = e[:, None, :] * masks[None, :, :]
    norm = jnp.sqrt(jnp.sum(masked * masked, axis=2, keepdims=True)) + 1e-10
    return jnp.concatenate([masked / norm, e[:, None, :]], axis=1)


def _reference_conditional(x, c, w1, b1, w2, b2, masks):
    B, C, H, W = x.shape
    pooled = jnp.mean(x.reshape(B, C, H * W), axis=-1)
    e = pooled @ w1 + b1
    e = e @ w2 + b2
    sel = jnp.maximum(masks[c], 0.0)
    masked = e * sel
    mask_norm = jnp.sum(jnp.abs(sel))
    embed_norm = jnp.sqrt(jnp.sum(e * e))
    norm = jnp.sqrt(jnp.sum(masked * masked, axis=1, keepdims=True)) + 1e-10
    return masked / norm, mask_norm, embed_norm, e


# ---------------------------------------------------------------------------
# Deterministic parameter construction + smoke/correctness test
# ---------------------------------------------------------------------------
if __name__ == "__main__":
    B, C, H, W = 2, 4, 16, 16          # input images (small NCHW)
    HIDDEN = 1000                       # embeddingnet output dim (ResNet18 -> 1000)
    D = 64                              # args.dim_embed
    N_COND = 4                          # n_conditions

    key = jax.random.PRNGKey(0)
    kx, k1, k2, k3, k4, km, kc = jax.random.split(key, 7)

    x = jax.random.normal(kx, (B, C, H, W), dtype=jnp.float32)
    # stand-in embeddingnet linear: Linear(C, 1000)
    w1 = 0.05 * jax.random.normal(k1, (C, HIDDEN), dtype=jnp.float32)
    b1 = 0.01 * jax.random.normal(k2, (1, HIDDEN), dtype=jnp.float32)
    # resnet_linear: Linear(1000, dim_embed)
    w2 = 0.02 * jax.random.normal(k3, (HIDDEN, D), dtype=jnp.float32)
    b2 = 0.01 * jax.random.normal(k4, (1, D), dtype=jnp.float32)
    # learned masks: Embedding(n_conditions, dim_embed), init ~ N(0.9, 0.7)
    masks = 0.9 + 0.7 * jax.random.normal(km, (N_COND, D), dtype=jnp.float32)

    # Branch 1: c = None  -> [B, N_COND + 1, D]
    out_general = jax.block_until_ready(
        type_specific_general(x, w1, b1, w2, b2, masks))
    assert out_general.shape == (B, N_COND + 1, D)
    ref_general = _reference_general(x, w1, b1, w2, b2, masks)
    np.testing.assert_allclose(np.asarray(out_general), np.asarray(ref_general),
                               rtol=2e-3, atol=2e-4)

    # Branch 2: c given -> (masked_embedding, mask_norm, embed_norm, embedded_x)
    c = jax.random.randint(kc, (B,), 0, N_COND)
    me, mask_norm, embed_norm, embedded_x = jax.block_until_ready(
        type_specific_conditional(x, c, w1, b1, w2, b2, masks))
    assert me.shape == (B, D) and embedded_x.shape == (B, D)
    rme, rmn, ren, re = _reference_conditional(x, c, w1, b1, w2, b2, masks)
    np.testing.assert_allclose(np.asarray(me), np.asarray(rme), rtol=2e-3, atol=2e-4)
    np.testing.assert_allclose(np.asarray(embedded_x), np.asarray(re),
                               rtol=2e-3, atol=2e-4)
    np.testing.assert_allclose(float(mask_norm), float(rmn), rtol=2e-3, atol=2e-4)
    np.testing.assert_allclose(float(embed_norm), float(ren), rtol=2e-3, atol=2e-4)

    print("KERNEL_OK")
</pallas_src>

<mosaic_0001>
module attributes {stable_mosaic.version = 11 : i64} {
  func.func @_general_kernel(%arg0: i32, %arg1: i32, %arg2: memref<8x256xf32, #tpu.memory_space<vmem>>, %arg3: memref<4x64xf32, #tpu.memory_space<vmem>>, %arg4: memref<1x64xf32, #tpu.memory_space<vmem>>, %arg5: memref<4x64xf32, #tpu.memory_space<vmem>>, %arg6: memref<2x384xf32, #tpu.memory_space<vmem>>, %arg7: memref<8x1xf32, #tpu.memory_space<vmem>>) attributes {dimension_semantics = [#tpu.dimension_semantics<parallel>, #tpu.dimension_semantics<arbitrary>], iteration_bounds = array<i64: 1, 1>, scalar_prefetch = 0 : i64, scratch_operands = 1 : i64, tpu.core_type = #tpu.core_type<tc>, window_params = [{transform_indices = @transform_0, window_bounds = array<i64: 8, 256>}, {pipeline_mode = #tpu.pipeline_mode<synchronous>, transform_indices = @transform_1, window_bounds = array<i64: 4, 64>}, {pipeline_mode = #tpu.pipeline_mode<synchronous>, transform_indices = @transform_2, window_bounds = array<i64: 1, 64>}, {pipeline_mode = #tpu.pipeline_mode<synchronous>, transform_indices = @transform_3, window_bounds = array<i64: 4, 64>}, {transform_indices = @transform_4, window_bounds = array<i64: 2, 384>}]} {
    %c0_i32 = arith.constant 0 : i32
    %0 = arith.cmpi eq, %arg1, %c0_i32 : i32
    %1 = arith.extui %0 : i1 to i32
    %c0_i32_0 = arith.constant 0 : i32
    %2 = arith.cmpi ne, %1, %c0_i32_0 : i32
    scf.if %2 {
      %cst_8 = arith.constant 0.000000e+00 : f32
      %12 = vector.broadcast %cst_8 : f32 to vector<8x1xf32>
      %c0_9 = arith.constant 0 : index
      %c0_10 = arith.constant 0 : index
      %13 = vector.load %arg7[%c0_9, %c0_10] : memref<8x1xf32, #tpu.memory_space<vmem>>, vector<8x1xf32>
      tpu.vector_store %arg7[%c0_9, %c0_10], %12 {strides = array<i32>} : memref<8x1xf32, #tpu.memory_space<vmem>>, vector<8x1xf32>,
    } else {
    }
    %c0 = arith.constant 0 : index
    %c0_1 = arith.constant 0 : index
    %3 = vector.load %arg7[%c0, %c0_1] : memref<8x1xf32, #tpu.memory_space<vmem>>, vector<8x1xf32>
    %c0_2 = arith.constant 0 : index
    %c0_3 = arith.constant 0 : index
    %4 = vector.load %arg2[%c0_2, %c0_3] : memref<8x256xf32, #tpu.memory_space<vmem>>, vector<8x256xf32>
    %cst = arith.constant dense<0.000000e+00> : vector<8xf32>
    %5 = vector.multi_reduction <add>, %4, %cst [1] : vector<8x256xf32> to vector<8xf32>
    %6 = vector.shape_cast %5 : vector<8xf32> to vector<8x1xf32>
    %7 = arith.addf %3, %6 : vector<8x1xf32>
    %c0_4 = arith.constant 0 : index
    %c0_5 = arith.constant 0 : index
    %8 = vector.load %arg7[%c0_4, %c0_5] : memref<8x1xf32, #tpu.memory_space<vmem>>, vector<8x1xf32>
    tpu.vector_store %arg7[%c0_4, %c0_5], %7 {strides = array<i32>} : memref<8x1xf32, #tpu.memory_space<vmem>>, vector<8x1xf32>,
    %c0_i32_6 = arith.constant 0 : i32
    %9 = arith.cmpi eq, %arg1, %c0_i32_6 : i32
    %10 = arith.extui %9 : i1 to i32
    %c0_i32_7 = arith.constant 0 : i32
    %11 = arith.cmpi ne, %10, %c0_i32_7 : i32
    scf.if %11 {
      %c0_8 = arith.constant 0 : index
      %c0_9 = arith.constant 0 : index
      %12 = vector.load %arg4[%c0_8, %c0_9] : memref<1x64xf32, #tpu.memory_space<vmem>>, vector<1x64xf32>
      %c0_10 = arith.constant 0 : index
      %c0_11 = arith.constant 0 : index
      %13 = tpu.strided_load %arg7[%c0_10, %c0_11] {strides = array<i32: 4, 1>} : memref<8x1xf32, #tpu.memory_space<vmem>>, vector<2x1xf32>
      %cst_12 = arith.constant 3.906250e-03 : f32
      %14 = vector.broadcast %cst_12 : f32 to vector<2x1xf32>
      %15 = arith.mulf %13, %14 : vector<2x1xf32>
      %c0_13 = arith.constant 0 : index
      %c0_14 = arith.constant 0 : index
      %16 = vector.load %arg3[%c0_13, %c0_14] : memref<4x64xf32, #tpu.memory_space<vmem>>, vector<1x64xf32>
      %17 = vector.broadcast %15 : vector<2x1xf32> to vector<2x64xf32>
      %18 = vector.broadcast %16 : vector<1x64xf32> to vector<2x64xf32>
      %19 = arith.mulf %17, %18 : vector<2x64xf32>
      %20 = vector.broadcast %12 : vector<1x64xf32> to vector<2x64xf32>
      %21 = arith.addf %20, %19 : vector<2x64xf32>
      %c1 = arith.constant 1 : index
      %c0_15 = arith.constant 0 : index
      %22 = tpu.strided_load %arg7[%c1, %c0_15] {strides = array<i32: 4, 1>} : memref<8x1xf32, #tpu.memory_space<vmem>>, vector<2x1xf32>
      %cst_16 = arith.constant 3.906250e-03 : f32
      %23 = vector.broadcast %cst_16 : f32 to vector<2x1xf32>
      %24 = arith.mulf %22, %23 : vector<2x1xf32>
      %c1_17 = arith.constant 1 : index
      %c0_18 = arith.constant 0 : index
      %25 = vector.load %arg3[%c1_17, %c0_18] : memref<4x64xf32, #tpu.memory_space<vmem>>, vector<1x64xf32>
      %26 = vector.broadcast %24 : vector<2x1xf32> to vector<2x64xf32>
      %27 = vector.broadcast %25 : vector<1x64xf32> to vector<2x64xf32>
      %28 = arith.mulf %26, %27 : vector<2x64xf32>
      %29 = arith.addf %21, %28 : vector<2x64xf32>
      %c2 = arith.constant 2 : index
      %c0_19 = arith.constant 0 : index
      %30 = tpu.strided_load %arg7[%c2, %c0_19] {strides = array<i32: 4, 1>} : memref<8x1xf32, #tpu.memory_space<vmem>>, vector<2x1xf32>
      %cst_20 = arith.constant 3.906250e-03 : f32
      %31 = vector.broadcast %cst_20 : f32 to vector<2x1xf32>
      %32 = arith.mulf %30, %31 : vector<2x1xf32>
      %c2_21 = arith.constant 2 : index
      %c0_22 = arith.constant 0 : index
      %33 = vector.load %arg3[%c2_21, %c0_22] : memref<4x64xf32, #tpu.memory_space<vmem>>, vector<1x64xf32>
      %34 = vector.broadcast %32 : vector<2x1xf32> to vector<2x64xf32>
      %35 = vector.broadcast %33 : vector<1x64xf32> to vector<2x64xf32>
      %36 = arith.mulf %34, %35 : vector<2x64xf32>
      %37 = arith.addf %29, %36 : vector<2x64xf32>
      %c3 = arith.constant 3 : index
      %c0_23 = arith.constant 0 : index
      %38 = tpu.strided_load %arg7[%c3, %c0_23] {strides = array<i32: 4, 1>} : memref<8x1xf32, #tpu.memory_space<vmem>>, vector<2x1xf32>
      %cst_24 = arith.constant 3.906250e-03 : f32
      %39 = vector.broadcast %cst_24 : f32 to vector<2x1xf32>
      %40 = arith.mulf %38, %39 : vector<2x1xf32>
      %c3_25 = arith.constant 3 : index
      %c0_26 = arith.constant 0 : index
      %41 = vector.load %arg3[%c3_25, %c0_26] : memref<4x64xf32, #tpu.memory_space<vmem>>, vector<1x64xf32>
      %42 = vector.broadcast %40 : vector<2x1xf32> to vector<2x64xf32>
      %43 = vector.broadcast %41 : vector<1x64xf32> to vector<2x64xf32>
      %44 = arith.mulf %42, %43 : vector<2x64xf32>
      %45 = arith.addf %37, %44 : vector<2x64xf32>
      %c0_27 = arith.constant 0 : index
      %c0_28 = arith.constant 0 : index
      %46 = vector.load %arg5[%c0_27, %c0_28] : memref<4x64xf32, #tpu.memory_space<vmem>>, vector<1x64xf32>
      %47 = vector.broadcast %46 : vector<1x64xf32> to vector<2x64xf32>
      %48 = arith.mulf %45, %47 : vector<2x64xf32>
      %49 = arith.mulf %48, %48 : vector<2x64xf32>
      %cst_29 = arith.constant dense<0.000000e+00> : vector<2xf32>
      %50 = vector.multi_reduction <add>, %49, %cst_29 [1] : vector<2x64xf32> to vector<2xf32>
      %51 = vector.shape_cast %50 : vector<2xf32> to vector<2x1xf32>
      %cst_30 = arith.constant 9.99999968E-21 : f32
      %52 = vector.broadcast %cst_30 : f32 to vector<2x1xf32>
      %53 = arith.addf %51, %52 : vector<2x1xf32>
      %54 = math.rsqrt %53 : vector<2x1xf32>
      %55 = vector.broadcast %54 : vector<2x1xf32> to vector<2x64xf32>
      %56 = arith.mulf %48, %55 : vector<2x64xf32>
      %c1_31 = arith.constant 1 : index
      %c0_32 = arith.constant 0 : index
      %57 = vector.load %arg5[%c1_31, %c0_32] : memref<4x64xf32, #tpu.memory_space<vmem>>, vector<1x64xf32>
      %58 = vector.broadcast %57 : vector<1x64xf32> to vector<2x64xf32>
      %59 = arith.mulf %45, %58 : vector<2x64xf32>
      %60 = arith.mulf %59, %59 : vector<2x64xf32>
      %cst_33 = arith.constant dense<0.000000e+00> : vector<2xf32>
      %61 = vector.multi_reduction <add>, %60, %cst_33 [1] : vector<2x64xf32> to vector<2xf32>
      %62 = vector.shape_cast %61 : vector<2xf32> to vector<2x1xf32>
      %cst_34 = arith.constant 9.99999968E-21 : f32
      %63 = vector.broadcast %cst_34 : f32 to vector<2x1xf32>
      %64 = arith.addf %62, %63 : vector<2x1xf32>
      %65 = math.rsqrt %64 : vector<2x1xf32>
      %66 = vector.broadcast %65 : vector<2x1xf32> to vector<2x64xf32>
      %67 = arith.mulf %59, %66 : vector<2x64xf32>
      %c2_35 = arith.constant 2 : index
      %c0_36 = arith.constant 0 : index
      %68 = vector.load %arg5[%c2_35, %c0_36] : memref<4x64xf32, #tpu.memory_space<vmem>>, vector<1x64xf32>
      %69 = vector.broadcast %68 : vector<1x64xf32> to vector<2x64xf32>
      %70 = arith.mulf %45, %69 : vector<2x64xf32>
      %71 = arith.mulf %70, %70 : vector<2x64xf32>
      %cst_37 = arith.constant dense<0.000000e+00> : vector<2xf32>
      %72 = vector.multi_reduction <add>, %71, %cst_37 [1] : vector<2x64xf32> to vector<2xf32>
      %73 = vector.shape_cast %72 : vector<2xf32> to vector<2x1xf32>
      %cst_38 = arith.constant 9.99999968E-21 : f32
      %74 = vector.broadcast %cst_38 : f32 to vector<2x1xf32>
      %75 = arith.addf %73, %74 : vector<2x1xf32>
      %76 = math.rsqrt %75 : vector<2x1xf32>
      %77 = vector.broadcast %76 : vector<2x1xf32> to vector<2x64xf32>
      %78 = arith.mulf %70, %77 : vector<2x64xf32>
      %c3_39 = arith.constant 3 : index
      %c0_40 = arith.constant 0 : index
      %79 = vector.load %arg5[%c3_39, %c0_40] : memref<4x64xf32, #tpu.memory_space<vmem>>, vector<1x64xf32>
      %80 = vector.broadcast %79 : vector<1x64xf32> to vector<2x64xf32>
      %81 = arith.mulf %45, %80 : vector<2x64xf32>
      %82 = arith.mulf %81, %81 : vector<2x64xf32>
      %cst_41 = arith.constant dense<0.000000e+00> : vector<2xf32>
      %83 = vector.multi_reduction <add>, %82, %cst_41 [1] : vector<2x64xf32> to vector<2xf32>
      %84 = vector.shape_cast %83 : vector<2xf32> to vector<2x1xf32>
      %cst_42 = arith.constant 9.99999968E-21 : f32
      %85 = vector.broadcast %cst_42 : f32 to vector<2x1xf32>
      %86 = arith.addf %84, %85 : vector<2x1xf32>
      %87 = math.rsqrt %86 : vector<2x1xf32>
      %88 = vector.broadcast %87 : vector<2x1xf32> to vector<2x64xf32>
      %89 = arith.mulf %81, %88 : vector<2x64xf32>
      %90 = tpu.concatenate %56, %67, %78, %89, %45 in 1 : vector<2x64xf32>, vector<2x64xf32>, vector<2x64xf32>, vector<2x64xf32>, vector<2x64xf32> -> vector<2x320xf32>
      %cst_43 = arith.constant 0.000000e+00 : f32
      %91 = vector.broadcast %cst_43 : f32 to vector<2x64xf32>
      %92 = tpu.concatenate %90, %91 in 1 : vector<2x320xf32>, vector<2x64xf32> -> vector<2x384xf32>
      %c0_44 = arith.constant 0 : index
      %c0_45 = arith.constant 0 : index
      %93 = vector.load %arg6[%c0_44, %c0_45] : memref<2x384xf32, #tpu.memory_space<vmem>>, vector<2x384xf32>
      tpu.vector_store %arg6[%c0_44, %c0_45], %92 {strides = array<i32>} : memref<2x384xf32, #tpu.memory_space<vmem>>, vector<2x384xf32>,
    } else {
    }
    return
  }
  func.func @transform_0(%arg0: i32, %arg1: i32) -> (i32, i32) {
    %c0_i32 = arith.constant 0 : i32
    return %arg0, %arg1 : i32, i32
  }
  func.func @transform_1(%arg0: i32, %arg1: i32) -> (i32, i32) {
    %c0_i32 = arith.constant 0 : i32
    %c0_i32_0 = arith.constant 0 : i32
    %c0_i32_1 = arith.constant 0 : i32
    return %c0_i32, %c0_i32_0 : i32, i32
  }
  func.func @transform_2(%arg0: i32, %arg1: i32) -> (i32, i32) {
    %c0_i32 = arith.constant 0 : i32
    %c0_i32_0 = arith.constant 0 : i32
    %c0_i32_1 = arith.constant 0 : i32
    return %c0_i32, %c0_i32_0 : i32, i32
  }
  func.func @transform_3(%arg0: i32, %arg1: i32) -> (i32, i32) {
    %c0_i32 = arith.constant 0 : i32
    %c0_i32_0 = arith.constant 0 : i32
    %c0_i32_1 = arith.constant 0 : i32
    return %c0_i32, %c0_i32_0 : i32, i32
  }
  func.func @transform_4(%arg0: i32, %arg1: i32) -> (i32, i32) {
    %c0_i32 = arith.constant 0 : i32
    %c0_i32_0 = arith.constant 0 : i32
    return %arg0, %c0_i32 : i32, i32
  }
}

</mosaic_0001>

<bundles_post_ra>
// kernel: tpu_custom_call.1
= control target key start
LH: loop header
LB: loop body
LE: loop exit
PB: predicated region body
PF: predicated region fallthrough
CT: control target
= control target key end

     0   :  { %9 = vsyncpa [#allocation4], 0  ;;  %s409_s0 = inlined_call_operand.hbm [shape: f32[8,256], index: 0, kind: input, shape index: {}]   ;;  %s410_s1 = inlined_call_operand.hbm [shape: f32[4,64], index: 1, kind: input, shape index: {}]   ;;  %s411_s2 = inlined_call_operand.vmem [shape: f32[1,64], index: 2, kind: input, shape index: {}]   ;;  %s412_s3 = inlined_call_operand.vmem [shape: f32[4,64], index: 3, kind: input, shape index: {}]   ;;  %s413_s4 = inlined_call_operand.hbm [shape: f32[2,384], index: 4, kind: output, shape index: {}]  }
   0x1   :  { %10 = vsyncpa [#allocation7], 0 }
   0x2   :  { %11 = vsyncpa [#allocation5], 0  ;;  %s326_s15 = smov [#allocation3]   ;;  %s327_s17 = smov [#allocation6]  }
   0x3   :  { %s18_s16 = sshll.u32 %s326_s15, 4  ;;  %s28_s18 = sshll.u32 %s327_s17, 4  ;;  %s19_s16 = int_to_ptr.vmem [resolvable:$true] %s18_s16  ;;  %s29_s18 = int_to_ptr.vmem [resolvable:$true] %s28_s18 }
   0x4   :  { %s254_s21 = scalar_lea.hbm %s409_s0, 256 }
   0x5   :  { %p255_p0 = scmp.ne.s32.totalorder %s409_s0, %s254_s21  ;;  %p258_p1 = scmp.lt.u32.totalorder %s254_s21, %s409_s0 }
   0x7   :  { %p260_p2 = pnand %p258_p1, %p255_p0 }
   0x9   :  { %263 = shalt.err (!%p260_p2)
}
   0xa   :  { %s264_s26 = scalar_lea.vmem %s19_s16, 256  ;;  %p269_p4 = scmp.lt.s32.totalorder %s19_s16, %s19_s16 }
   0xb   :  { %p265_p3 = scmp.ne.s32.totalorder %s19_s16, %s264_s26  ;;  %p270_p5 = scmp.lt.s32.totalorder %s264_s26, %s264_s26 }
   0xd   :  { %p271_p6 = por %p270_p5, %p269_p4 }
   0xf   :  { %p272_p7 = pnand %p271_p6, %p265_p3 }
  0x11   :  { %275 = shalt.err (!%p272_p7)
}
  0x12   :  { %21 = dma.hbm_to_vmem [thread:$0]  %s409_s0, 256, %s19_s16, [#allocation4]  }
  0x13   :  { %s276_s5 = scalar_lea.hbm %s410_s1, 64 }
  0x14   :  { %p277_p8 = scmp.ne.s32.totalorder %s410_s1, %s276_s5  ;;  %p280_p9 = scmp.lt.u32.totalorder %s276_s5, %s410_s1 }
  0x16   :  { %p282_p10 = pnand %p280_p9, %p277_p8 }
  0x18   :  { %285 = shalt.err (!%p282_p10)
}
  0x19   :  { %s286_s10 = scalar_lea.vmem %s29_s18, 64  ;;  %p291_p12 = scmp.lt.s32.totalorder %s29_s18, %s29_s18 }
  0x1a   :  { %p287_p11 = scmp.ne.s32.totalorder %s29_s18, %s286_s10  ;;  %p292_p13 = scmp.lt.s32.totalorder %s286_s10, %s286_s10 }
  0x1c   :  { %p293_p0 = por %p292_p13, %p291_p12 }
  0x1e   :  { %p294_p1 = pnand %p293_p0, %p287_p11 }
  0x20   :  { %297 = shalt.err (!%p294_p1)
}
  0x21   :  { %31 = dma.hbm_to_vmem [thread:$0]  %s410_s1, 64, %s29_s18, [#allocation7]  }
  0x22   :  { %320 = dma.done.wait [#allocation4], 256  }
  0x23   :  { %321 = vsyncadd [#allocation4], 4294967040 }
  0x24   :  { %322 = dma.done.wait [#allocation7], 64  }
  0x25   :  { %323 = vsyncadd [#allocation7], 4294967232  ;;  %vm46_vm0 = vcmask 7168   ;;  %v328_v0 = vmov 0.0   ;;  %v49_v1 = vld [vmem:[#allocation3] sm:$0xff]  ;;  %v50_v2 = vld [vmem:[#allocation3 + $0x8] sm:$0xff]  ;;  %v198_v63 = vlaneseq }
  0x26   :  { %47 = vst.msk [vmem:[#allocation2] sm:$0xff] %vm46_vm0, %v328_v0  ;;  %v51_v3 = vadd.f32 %v50_v2, %v49_v1  ;;  %v329_v4 = vmov 0   ;;  %v228_v16 = vld [vmem:[#allocation6] ss:$0 sm:$0xff]  ;;  %v230_v17 = vld [vmem:[#allocation6 + $0x1] ss:$0 sm:$0xff] }
  0x27   :  { %245 = vset.pattern.permute.xlu1 %v329_v4  ;;  %244 = vset.pattern.permute.xlu0 %v329_v4  ;;  %v229_v19 = vld [vmem:[%s411_s2] ss:$0 sm:$0xff]  ;;  %v231_v22 = vld [vmem:[#allocation6 + $0x2] ss:$0 sm:$0xff]  ;;  %v232_v28 = vld [vmem:[#allocation6 + $0x3] ss:$0 sm:$0xff] }
  0x28   :  { %52 = vadd.xlane.f32.xlu0 %v51_v3  ;;  %v236_v32 = vld [vmem:[%s412_s3 + $0x3] ss:$0 sm:$0xff]  ;;  %v234_v33 = vld [vmem:[%s412_s3 + $0x1] ss:$0 sm:$0xff]  ;;  %v233_v34 = vld [vmem:[%s412_s3] ss:$0 sm:$0xff] }
  0x29   :  { %vm133_vm1 = vcmask 517120   ;;  %v235_v39 = vld [vmem:[%s412_s3 + $0x2] ss:$0 sm:$0xff]  ;;  %s330_s3 = smov 64   ;;  %v331_v61 = vmov 1983009808  }
  0x2a   :  { %v196_v62 = vunpack.c.l.s4 %v331_v61  ;;  %v199_v4 = vshrl.u32 %v198_v63, 7  ;;  %vm187_vm2 = vcmask 523264   ;;  %s332_s20 = smov [#allocation8]  }
  0x2b   :  { %s218_s21 = sshll.u32 %s332_s20, 4  ;;  %s219_s21 = int_to_ptr.vmem [resolvable:$true] %s218_s21 }
  0x2c   :  { %v197_v3 = vunpack.c.0.s8 %v196_v62  ;;  %s298_s22 = scalar_lea.vmem %s219_s21, 96  ;;  %p303_p3 = scmp.lt.s32.totalorder %s219_s21, %s219_s21 }
  0x2d   :  { %v48_v5 = vld [vmem:[#allocation2] sm:$0xff]  ;;  %p299_p2 = scmp.ne.s32.totalorder %s219_s21, %s298_s22  ;;  %p304_p4 = scmp.lt.s32.totalorder %s298_s22, %s298_s22 }
  0x2f   :  { %p305_p5 = por %p304_p4, %p303_p3 }
  0x31   :  { %p306_p6 = pnand %p305_p5, %p299_p2 }
  0xb5   :  { %v53_v6 = vpop.xlane.xlu0 %52 }
  0xb6   :  { %v54_v7 = vadd.f32 %v53_v6, %v48_v5 }
  0xb8   :  { %56 = vst.msk [vmem:[#allocation2] sm:$0xff] %vm46_vm0, %v54_v7  ;;  %v200_v7 = vsub.s32 %v197_v3, %v199_v4 }
  0xbf   :  { %v82_v8 = vld [vmem:[#allocation2 + $0x1] ss:$4 sm:$0x3]  ;;  %v61_v9 = vld [vmem:[#allocation2] ss:$4 sm:$0x3] }
  0xc0   :  { %v83_v10 = vmul.f32 0.00390625, %v82_v8  ;;  %v62_v11 = vmul.f32 0.00390625, %v61_v9  ;;  %v97_v12 = vld [vmem:[#allocation2 + $0x2] ss:$4 sm:$0x3] }
  0xc1   :  { %v98_v13 = vmul.f32 0.00390625, %v97_v12  ;;  %v112_v14 = vld [vmem:[#allocation2 + $0x3] ss:$4 sm:$0x3] }
  0xc2   :  { %87 = vperm.xlu1 %245, %v83_v10   ;;  %66 = vperm.xlu0 %244, %v62_v11   ;;  %v113_v15 = vmul.f32 0.00390625, %v112_v14 }
  0xc6   :  { %102 = vperm.xlu1 %245, %v98_v13  }
  0xca   :  { %117 = vperm.xlu1 %245, %v113_v15  }
 0x141   :  { %v88_v18 = vpop.permute.xlu1 %87  ;;  %v67_v20 = vpop.permute.xlu0 %66 }
 0x142   :  { %v73_v21 = vmul.f32 %v228_v16, %v67_v20  ;;  %v94_v23 = vmul.f32 %v230_v17, %v88_v18 }
 0x144   :  { %v80_v24 = vadd.f32 %v229_v19, %v73_v21 }
 0x145   :  { %v103_v25 = vpop.permute.xlu1 %102 }
 0x146   :  { %v95_v26 = vadd.f32 %v94_v23, %v80_v24  ;;  %v109_v27 = vmul.f32 %v231_v22, %v103_v25 }
 0x148   :  { %v110_v30 = vadd.f32 %v109_v27, %v95_v26 }
 0x149   :  { %v118_v29 = vpop.permute.xlu1 %117 }
 0x14a   :  { %v124_v31 = vmul.f32 %v232_v28, %v118_v29 }
 0x14c   :  { %v125_v35 = vadd.f32 %v124_v31, %v110_v30 }
 0x14e   :  { %v171_v36 = vmul.f32 %v236_v32, %v125_v35  ;;  %v145_v37 = vmul.f32 %v234_v33, %v125_v35  ;;  %v131_v38 = vmul.f32 %v233_v34, %v125_v35  ;;  %v158_v45 = vmul.f32 %v235_v39, %v125_v35 }
 0x14f   :  { %v190_v9 = vsel %vm187_vm2, %v125_v35, 0.0 }
 0x150   :  { %v172_v40 = vmul.f32 %v171_v36, %v171_v36  ;;  %v146_v41 = vmul.f32 %v145_v37, %v145_v37  ;;  %v132_v44 = vmul.f32 %v131_v38, %v131_v38  ;;  %v159_v47 = vmul.f32 %v158_v45, %v158_v45 }
 0x151   :  { %v208_v14 = vrot.slane %v190_v9, %v200_v7 }
 0x152   :  { %v173_v42 = vsel %vm133_vm1, %v172_v40, 0.0  ;;  %v147_v43 = vsel %vm133_vm1, %v146_v41, 0.0  ;;  %v134_v46 = vsel %vm133_vm1, %v132_v44, 0.0  ;;  %v160_v48 = vsel %vm133_vm1, %v159_v47, 0.0 }
 0x153   :  { %174 = vadd.xlane.f32.xlu0 %v173_v42  ;;  %148 = vadd.xlane.f32.xlu1 %v147_v43 }
 0x157   :  { %135 = vadd.xlane.f32.xlu1 %v134_v46 }
 0x15b   :  { %161 = vadd.xlane.f32.xlu1 %v160_v48 }
 0x1e0   :  { %v175_v49 = vpop.xlane.xlu0 %174  ;;  %v149_v50 = vpop.xlane.xlu1 %148 }
 0x1e1   :  { %v150_v51 = vadd.f32 1e-20, %v149_v50  ;;  %v176_v52 = vadd.f32 1e-20, %v175_v49 }
 0x1e3   :  { %246 = vrsqrt.f32 %v150_v51 }
 0x1e4   :  { %248 = vrsqrt.f32 %v176_v52  ;;  %v136_v57 = vpop.xlane.xlu1 %135 }
 0x1e5   :  { %v137_v59 = vadd.f32 1e-20, %v136_v57 }
 0x1e7   :  { %250 = vrsqrt.f32 %v137_v59 }
 0x1e8   :  { %v162_v58 = vpop.xlane.xlu1 %161 }
 0x1e9   :  { %v163_v60 = vadd.f32 1e-20, %v162_v58 }
 0x1eb   :  { %252 = vrsqrt.f32 %v163_v60 }
 0x1ed   :  { %v247_v53 = vpop.eup %246 }
 0x1ee   :  { %v152_v54 = vmul.f32 %v247_v53, %v145_v37  ;;  %v249_v55 = vpop.eup %248 }
 0x1ef   :  { %v178_v56 = vmul.f32 %v249_v55, %v171_v36 }
 0x1f0   :  { %180 = vrot.lane.b32.xlu1 %v152_v54, %s330_s3 }
 0x1f1   :  { %v251_v0 = vpop.eup %250 }
 0x1f2   :  { %v139_v5 = vmul.f32 %v251_v0, %v131_v38 }
 0x1f4   :  { %184 = vrot.lane.b32.xlu1 %v178_v56, %s330_s3 }
 0x1f5   :  { %v253_v1 = vpop.eup %252 }
 0x1f6   :  { %v165_v6 = vmul.f32 %v253_v1, %v158_v45 }
 0x262   :  { %v181_v2 = vpop.permute.xlu1 %180 }
 0x263   :  { %v188_v10 = vsel %vm187_vm2, %v139_v5, %v181_v2 }
 0x266   :  { %v185_v8 = vpop.permute.xlu1 %184 }
 0x267   :  { %v189_v11 = vsel %vm187_vm2, %v165_v6, %v185_v8 }
 0x268   :  { %v194_v12 = vcombine.low %v188_v10, %v189_v11 }
 0x26a   :  { %v201_v13 = vrot.slane %v194_v12, %v200_v7 }
 0x26c   :  { %v209_v15 = vcombine.low %v201_v13, %v208_v14 }
 0x26e   :  { %211 = vst [vmem:[#allocation8] sm:$0x3f] %v209_v15 }
 0x26f   :  { %309 = shalt.err (!%p306_p6)
}
 0x270   :  { %s310_s25 = scalar_lea.hbm %s413_s4, 96 }
 0x271   :  { %p311_p7 = scmp.ne.s32.totalorder %s413_s4, %s310_s25  ;;  %p314_p8 = scmp.lt.u32.totalorder %s310_s25, %s413_s4 }
 0x273   :  { %p316_p9 = pnand %p314_p8, %p311_p7 }
 0x275   :  { %319 = shalt.err (!%p316_p9)
}
 0x276   :  { %221 = dma.vmem_to_hbm [thread:$0]  %s219_s21, 96, %s413_s4, [#allocation5]  }
 0x277   :  { %324 = dma.done.wait [#allocation5], 96  }
 0x278   :  { %325 = vsyncadd [#allocation5], 4294967200 }
 0x279   :  { %225 = vsyncpa [#allocation4], 1 }
 0x27a   :  { %226 = vsyncpa [#allocation7], 1 }
 0x27b   :  { %227 = vsyncpa [#allocation5], 1 }

</bundles_post_ra>
